<compile_context>
chip_gen: v6e
topology: v6e:2x2x1
jax: 0.10.0
libtpu: 0.0.40
codegen_flags: <defaults>
</compile_context>

<pallas_src>
import functools
from math import sqrt

import jax
import jax.numpy as jnp
from jax.experimental import pallas as pl
from jax.experimental.pallas import tpu as pltpu


# --------------------------------------------------------------------------
# helpers
# --------------------------------------------------------------------------
def _round_up(x, m):
    return (x + m - 1) // m * m


def _pick_tile(dim, candidates):
    """Largest aligned tile that evenly divides `dim`, else the full dim."""
    for c in candidates:
        if c <= dim and dim % c == 0:
            return c
    return dim


# --------------------------------------------------------------------------
# Kernel 1: tiled dense / nn.Linear   (y = x @ W + b), bf16 MXU, f32 accum
# --------------------------------------------------------------------------
def _linear_kernel(x_ref, w_ref, b_ref, o_ref, acc_ref):
    k = pl.program_id(2)

    @pl.when(k == 0)
    def _init():
        acc_ref[...] = jnp.zeros_like(acc_ref)

    acc_ref[...] += jnp.dot(x_ref[...].astype(jnp.bfloat16),
                            w_ref[...].astype(jnp.bfloat16),
                            preferred_element_type=jnp.float32)

    @pl.when(k == pl.num_programs(2) - 1)
    def _finalize():
        o_ref[...] = (acc_ref[...] + b_ref[...]).astype(o_ref.dtype)


def pallas_linear(x, w, b, out_dtype=jnp.bfloat16):
    """x: (M, K) f32/bf16, w: (K, N) bf16, b: (N,) f32 -> (M, N) out_dtype."""
    m, k_dim = x.shape
    n = w.shape[1]

    # Row tile: never a degenerate full-M block; pad M to a tile multiple.
    tm = min(512, _round_up(m, 8))
    m_pad = _round_up(m, tm)
    if m_pad != m:
        x = jnp.pad(x, ((0, m_pad - m), (0, 0)))

    tn = _pick_tile(n, (512, 256, 128))
    tk = _pick_tile(k_dim, (1024, 512, 256, 128))
    # TODO(synk): pad K/N to 128 multiples too for shapes not divisible by 128.
    b2 = b.reshape(1, n)

    out = pl.pallas_call(
        _linear_kernel,
        out_shape=jax.ShapeDtypeStruct((m_pad, n), out_dtype),
        grid=(m_pad // tm, n // tn, k_dim // tk),
        in_specs=[
            pl.BlockSpec((tm, tk), lambda i, j, kk: (i, kk)),
            pl.BlockSpec((tk, tn), lambda i, j, kk: (kk, j)),
            pl.BlockSpec((1, tn), lambda i, j, kk: (0, j)),
        ],
        out_specs=pl.BlockSpec((tm, tn), lambda i, j, kk: (i, j)),
        scratch_shapes=[pltpu.VMEM((tm, tn), jnp.float32)],
        compiler_params=pltpu.CompilerParams(
            dimension_semantics=("parallel", "parallel", "arbitrary"),
            vmem_limit_bytes=64 * 1024 * 1024),
    )(x, w, b2)
    return out[:m] if m_pad != m else out


# --------------------------------------------------------------------------
# Kernel 2: scaled-dot-product attention
#   grid = (B, S // tq); per step: all H heads, one query tile.
#   Output context is merged-head, lane-dense (B, S, H*d_k).
# --------------------------------------------------------------------------
def _attention_kernel(*refs, scale, num_heads, d_k, use_mask, write_probs):
    q_ref, k_ref, v_ref = refs[0], refs[1], refs[2]
    nxt = 3
    m_ref = None
    if use_mask:
        m_ref = refs[nxt]
        nxt += 1
    ctx_ref = refs[nxt]
    probs_ref = refs[nxt + 1] if write_probs else None

    # Fold the 1/sqrt(d_k) scale into q (tq*d_k muls per head, not tq*S).
    q = (q_ref[0].astype(jnp.float32) * jnp.float32(scale)).astype(jnp.bfloat16)
    k = k_ref[0].astype(jnp.bfloat16)          # (H, S, d_k)
    v = v_ref[0].astype(jnp.bfloat16)          # (H, S, d_k)

    # QK^T batched over heads, bf16 operands, f32 accumulation.
    scores = jnp.einsum("hqd,hkd->hqk", q, k,
                        preferred_element_type=jnp.float32)     # (H, tq, S)

    if use_mask:
        m = m_ref[0]                                            # (tq, S) int8
        scores = jnp.where(m[None, :, :] == 0, jnp.float32(-1e9), scores)

    # Numerically stable softmax over the last dim (f32 intermediates).
    scores = scores - jnp.max(scores, axis=-1, keepdims=True)
    e = jnp.exp(scores)
    denom = jnp.sum(e, axis=-1, keepdims=True)
    if write_probs:
        probs = e / denom                       # exact: stored probs sum to 1
    else:
        probs = e * pl.reciprocal(denom, approx=True)   # EUP fast path

    ctx = jnp.einsum("hqk,hkd->hqd", probs.astype(jnp.bfloat16), v,
                     preferred_element_type=jnp.float32)        # (H, tq, d_k)

    # Merge heads in-kernel: static lane-slice stores into the (tq, H*d_k)
    # output block -> HBM writeback is one lane-dense (tq, D) tile.
    for h in range(num_heads):
        ctx_ref[0, :, h * d_k:(h + 1) * d_k] = ctx[h].astype(ctx_ref.dtype)

    if write_probs:
        probs_ref[0] = probs.astype(probs_ref.dtype)


def pallas_attention(q, k, v, mask=None, *, return_probs=False):
    """q,k,v: (B, H, S, d_k) bf16; mask: (B, S, S) int8 or None.

    Returns (context (B, S, H*d_k) bf16, probs (B, H, S, S) bf16 or None).
    """
    B, H, S, d_k = q.shape
    D = H * d_k
    scale = 1.0 / sqrt(d_k)
    tq = _pick_tile(S, (256, 128))      # query tile (full S for small seqs)
    n_q = S // tq

    kern = functools.partial(_attention_kernel, scale=scale, num_heads=H,
                             d_k=d_k, use_mask=mask is not None,
                             write_probs=return_probs)

    in_specs = [
        pl.BlockSpec((1, H, tq, d_k), lambda b, qi: (b, 0, qi, 0)),
        pl.BlockSpec((1, H, S, d_k), lambda b, qi: (b, 0, 0, 0)),
        pl.BlockSpec((1, H, S, d_k), lambda b, qi: (b, 0, 0, 0)),
    ]
    inputs = [q, k, v]
    if mask is not None:
        in_specs.append(pl.BlockSpec((1, tq, S), lambda b, qi: (b, qi, 0)))
        inputs.append(mask)

    ctx_shape = jax.ShapeDtypeStruct((B, S, D), jnp.bfloat16)
    ctx_spec = pl.BlockSpec((1, tq, D), lambda b, qi: (b, qi, 0))
    if return_probs:
        out_shape = (ctx_shape,
                     jax.ShapeDtypeStruct((B, H, S, S), jnp.bfloat16))
        out_specs = (ctx_spec,
                     pl.BlockSpec((1, H, tq, S), lambda b, qi: (b, 0, qi, 0)))
    else:
        out_shape = ctx_shape
        out_specs = ctx_spec

    out = pl.pallas_call(
        kern,
        out_shape=out_shape,
        grid=(B, n_q),
        in_specs=in_specs,
        out_specs=out_specs,
        compiler_params=pltpu.CompilerParams(
            dimension_semantics=("parallel", "parallel"),
            vmem_limit_bytes=64 * 1024 * 1024),
    )(*inputs)

    if return_probs:
        return out[0], out[1]
    return out, None


# --------------------------------------------------------------------------
# MultiHeadAttention module (plain-JAX glue around the Pallas kernels)
# --------------------------------------------------------------------------
class MultiHeadAttention:
    def __init__(self, h: int, d_model: int, key, dropout_prob: float = 0.1,
                 store_attn: bool = False):
        assert d_model % h == 0
        self.h = h
        self.d_k = d_model // h
        self.d_model = d_model
        self.store_attn = store_attn  # materialize (B,H,S,S) probs on demand

        # 4 Linear(d_model, d_model) layers, PyTorch-style uniform init.
        # Weights are kept in bf16 (MXU-native, half the weight DMA).
        bound = 1.0 / sqrt(d_model)
        keys = jax.random.split(key, 8)
        self.weights = [
            jax.random.uniform(keys[2 * i], (d_model, d_model), jnp.float32,
                               -bound, bound).astype(jnp.bfloat16)
            for i in range(4)
        ]
        self.biases = [
            jax.random.uniform(keys[2 * i + 1], (d_model,), jnp.float32,
                               -bound, bound)
            for i in range(4)
        ]
        # Fused QKV weight for the self-attention fast path (one matmul).
        self.w_qkv = jnp.concatenate(self.weights[:3], axis=1)   # (D, 3D) bf16
        self.b_qkv = jnp.concatenate(self.biases[:3])            # (3D,)

        self.attn = None  # attention probs from the last forward (if stored)

    def __call__(self, query, key, value, mask=None):
        B, S, D = query.shape
        H, d_k = self.h, self.d_k

        # ---- Q/K/V projections (bf16 activations out) ---------------------
        # NOTE: the fused path is gated on Python object identity; under jit
        # with separately-traced but equal args it falls back to 3 matmuls
        # (perf cliff only, never a numerics bug).
        if query is key and key is value:
            qkv = pallas_linear(query.reshape(B * S, D), self.w_qkv, self.b_qkv)
            # one transpose does both the QKV split and the head split
            qkv = qkv.reshape(B, S, 3, H, d_k).transpose(2, 0, 3, 1, 4)
            q, k, v = qkv[0], qkv[1], qkv[2]            # (B, H, S, d_k) bf16
        else:
            def proj(x, w, b):
                y = pallas_linear(x.reshape(B * S, D), w, b)
                return y.reshape(B, S, H, d_k).transpose(0, 2, 1, 3)
            q = proj(query, self.weights[0], self.biases[0])
            k = proj(key, self.weights[1], self.biases[1])
            v = proj(value, self.weights[2], self.biases[2])

        # ---- mask: int8 (1 byte/elem), preserving torch's `mask == 0` -----
        mask_i8 = None if mask is None else \
            (mask.reshape(B, S, S) != 0).astype(jnp.int8)

        # ---- attention: lane-dense merged-head context (B, S, D) ----------
        ctx, probs = pallas_attention(q, k, v, mask_i8,
                                      return_probs=self.store_attn)
        self.attn = probs  # (B, H, S, S) bf16 or None

        # ---- output projection (context already merged & lane-dense) ------
        out = pallas_linear(ctx.reshape(B * S, D), self.weights[3],
                            self.biases[3], out_dtype=jnp.float32)
        # TODO(synk): dropout on attention probs is identity (eval mode).
        return out.reshape(B, S, D)


# --------------------------------------------------------------------------
# Pure-JAX f32 reference (uses the same bf16-rounded weights, f32 math)
# --------------------------------------------------------------------------
def reference_forward(weights, biases, h, query, key, value, mask=None):
    B, S, D = query.shape
    d_k = D // h
    ws = [w.astype(jnp.float32) for w in weights]

    def proj(x, w, b):
        y = x.reshape(B * S, D) @ w + b
        return y.reshape(B, S, h, d_k).transpose(0, 2, 1, 3)

    q = proj(query, ws[0], biases[0])
    k = proj(key, ws[1], biases[1])
    v = proj(value, ws[2], biases[2])
    scores = jnp.einsum("bhqd,bhkd->bhqk", q, k) / sqrt(d_k)
    if mask is not None:
        m = mask.reshape(B, 1, S, S)
        scores = jnp.where(m == 0, -1e9, scores)
    probs = jax.nn.softmax(scores, axis=-1)
    ctx = jnp.einsum("bhqk,bhkd->bhqd", probs, v)
    ctx = ctx.transpose(0, 2, 1, 3).reshape(B * S, h * d_k)
    out = (ctx @ ws[3] + biases[3]).reshape(B, S, D)
    return out, probs


if __name__ == "__main__":
    key = jax.random.PRNGKey(0)
    k_param, k_x, k_q, k_k, k_v = jax.random.split(key, 5)

    B, S, d_model, h = 2, 8, 32, 4
    mha = MultiHeadAttention(h=h, d_model=d_model, key=k_param)

    # bf16 MXU operands + bf16 intermediate activations => ~1% tolerance.
    TOL = dict(atol=2e-2, rtol=2e-2)

    # --- run 1: self-attention + causal mask (fused QKV, probs stored) ------
    x = jax.random.normal(k_x, (B, S, d_model), jnp.float32)
    mask = jnp.broadcast_to(jnp.tril(jnp.ones((S, S), jnp.float32)), (B, S, S))
    mha.store_attn = True
    out1 = jax.block_until_ready(mha(x, x, x, mask))
    ref1, ref_probs1 = reference_forward(mha.weights, mha.biases, h, x, x, x, mask)
    assert out1.shape == (B, S, d_model)
    assert jnp.allclose(out1, ref1, **TOL), "run1 output mismatch"
    assert mha.attn is not None
    assert jnp.allclose(mha.attn.astype(jnp.float32), ref_probs1, **TOL), \
        "run1 probs mismatch"

    # --- run 2: distinct q/k/v, no mask (separate projections, no probs) ----
    query = jax.random.normal(k_q, (B, S, d_model), jnp.float32)
    kk = jax.random.normal(k_k, (B, S, d_model), jnp.float32)
    value = jax.random.normal(k_v, (B, S, d_model), jnp.float32)
    mha.store_attn = False
    out2 = jax.block_until_ready(mha(query, kk, value, None))
    ref2, _ = reference_forward(mha.weights, mha.biases, h, query, kk, value, None)
    assert jnp.allclose(out2, ref2, **TOL), "run2 output mismatch"

    print("KERNEL_OK")
</pallas_src>

<mosaic_0001>
module attributes {stable_mosaic.version = 11 : i64} {
  func.func @_linear_kernel(%arg0: i32, %arg1: i32, %arg2: i32, %arg3: memref<16x32xf32, #tpu.memory_space<vmem>>, %arg4: memref<32x96xbf16, #tpu.memory_space<vmem>>, %arg5: memref<1x96xf32, #tpu.memory_space<vmem>>, %arg6: memref<16x96xbf16, #tpu.memory_space<vmem>>, %arg7: memref<16x96xf32, #tpu.memory_space<vmem>>) attributes {dimension_semantics = [#tpu.dimension_semantics<parallel>, #tpu.dimension_semantics<parallel>, #tpu.dimension_semantics<arbitrary>], iteration_bounds = array<i64: 1, 1, 1>, scalar_prefetch = 0 : i64, scratch_operands = 1 : i64, tpu.core_type = #tpu.core_type<tc>, window_params = [{transform_indices = @transform_0, window_bounds = array<i64: 16, 32>}, {transform_indices = @transform_1, window_bounds = array<i64: 32, 96>}, {transform_indices = @transform_2, window_bounds = array<i64: 1, 96>}, {transform_indices = @transform_3, window_bounds = array<i64: 16, 96>}]} {
    %c0_i32 = arith.constant 0 : i32
    %0 = arith.cmpi eq, %arg2, %c0_i32 : i32
    %1 = arith.extui %0 : i1 to i32
    %c0_i32_0 = arith.constant 0 : i32
    %2 = arith.cmpi ne, %1, %c0_i32_0 : i32
    scf.if %2 {
      %cst_10 = arith.constant 0.000000e+00 : f32
      %13 = vector.broadcast %cst_10 : f32 to vector<16x96xf32>
      %c0_11 = arith.constant 0 : index
      %c0_12 = arith.constant 0 : index
      %14 = vector.load %arg7[%c0_11, %c0_12] : memref<16x96xf32, #tpu.memory_space<vmem>>, vector<16x96xf32>
      tpu.vector_store %arg7[%c0_11, %c0_12], %13 {strides = array<i32>} : memref<16x96xf32, #tpu.memory_space<vmem>>, vector<16x96xf32>,
    } else {
    }
    %c0 = arith.constant 0 : index
    %c0_1 = arith.constant 0 : index
    %3 = vector.load %arg7[%c0, %c0_1] : memref<16x96xf32, #tpu.memory_space<vmem>>, vector<16x96xf32>
    %c0_2 = arith.constant 0 : index
    %c0_3 = arith.constant 0 : index
    %4 = vector.load %arg3[%c0_2, %c0_3] : memref<16x32xf32, #tpu.memory_space<vmem>>, vector<16x32xf32>
    %5 = arith.truncf %4 : vector<16x32xf32> to vector<16x32xbf16>
    %c0_4 = arith.constant 0 : index
    %c0_5 = arith.constant 0 : index
    %6 = vector.load %arg4[%c0_4, %c0_5] : memref<32x96xbf16, #tpu.memory_space<vmem>>, vector<32x96xbf16>
    %cst = arith.constant dense<0.000000e+00> : vector<16x96xf32>
    %7 = tpu.matmul %5, %6, %cst {dimension_numbers = #tpu.dot_dimension_numbers<[1], [0], [0], [1], [0, 0, 1, 1], [], []>} : vector<16x32xbf16>, vector<32x96xbf16>, vector<16x96xf32> -> vector<16x96xf32>
    %8 = arith.addf %3, %7 : vector<16x96xf32>
    %c0_6 = arith.constant 0 : index
    %c0_7 = arith.constant 0 : index
    %9 = vector.load %arg7[%c0_6, %c0_7] : memref<16x96xf32, #tpu.memory_space<vmem>>, vector<16x96xf32>
    tpu.vector_store %arg7[%c0_6, %c0_7], %8 {strides = array<i32>} : memref<16x96xf32, #tpu.memory_space<vmem>>, vector<16x96xf32>,
    %c0_i32_8 = arith.constant 0 : i32
    %10 = arith.cmpi eq, %arg2, %c0_i32_8 : i32
    %11 = arith.extui %10 : i1 to i32
    %c0_i32_9 = arith.constant 0 : i32
    %12 = arith.cmpi ne, %11, %c0_i32_9 : i32
    scf.if %12 {
      %c0_10 = arith.constant 0 : index
      %c0_11 = arith.constant 0 : index
      %13 = vector.load %arg7[%c0_10, %c0_11] : memref<16x96xf32, #tpu.memory_space<vmem>>, vector<16x96xf32>
      %c0_12 = arith.constant 0 : index
      %c0_13 = arith.constant 0 : index
      %14 = vector.load %arg5[%c0_12, %c0_13] : memref<1x96xf32, #tpu.memory_space<vmem>>, vector<1x96xf32>
      %15 = vector.broadcast %14 : vector<1x96xf32> to vector<16x96xf32>
      %16 = arith.addf %13, %15 : vector<16x96xf32>
      %17 = arith.truncf %16 : vector<16x96xf32> to vector<16x96xbf16>
      %c0_14 = arith.constant 0 : index
      %c0_15 = arith.constant 0 : index
      %18 = vector.load %arg6[%c0_14, %c0_15] : memref<16x96xbf16, #tpu.memory_space<vmem>>, vector<16x96xbf16>
      tpu.vector_store %arg6[%c0_14, %c0_15], %17 {strides = array<i32>} : memref<16x96xbf16, #tpu.memory_space<vmem>>, vector<16x96xbf16>,
    } else {
    }
    return
  }
  func.func @transform_0(%arg0: i32, %arg1: i32, %arg2: i32) -> (i32, i32) {
    %c0_i32 = arith.constant 0 : i32
    return %arg0, %arg2 : i32, i32
  }
  func.func @transform_1(%arg0: i32, %arg1: i32, %arg2: i32) -> (i32, i32) {
    %c0_i32 = arith.constant 0 : i32
    return %arg2, %arg1 : i32, i32
  }
  func.func @transform_2(%arg0: i32, %arg1: i32, %arg2: i32) -> (i32, i32) {
    %c0_i32 = arith.constant 0 : i32
    %c0_i32_0 = arith.constant 0 : i32
    return %c0_i32, %arg1 : i32, i32
  }
  func.func @transform_3(%arg0: i32, %arg1: i32, %arg2: i32) -> (i32, i32) {
    %c0_i32 = arith.constant 0 : i32
    return %arg0, %arg1 : i32, i32
  }
}

</mosaic_0001>

<bundles_post_ra>
// kernel: tpu_custom_call.1
= control target key start
LH: loop header
LB: loop body
LE: loop exit
PB: predicated region body
PF: predicated region fallthrough
CT: control target
= control target key end

     0   :  { %8 = vsyncpa [#allocation4], 0  ;;  %s312_s0 = inlined_call_operand.hbm [shape: f32[16,32], index: 0, kind: input, shape index: {}]   ;;  %s313_s1 = inlined_call_operand.hbm [shape: bf16[32,96], index: 1, kind: input, shape index: {}]   ;;  %s314_s2 = inlined_call_operand.vmem [shape: f32[1,96], index: 2, kind: input, shape index: {}]   ;;  %s315_s3 = inlined_call_operand.hbm [shape: bf16[16,96], index: 3, kind: output, shape index: {}]  }
   0x1   :  { %9 = vsyncpa [#allocation7], 0 }
   0x2   :  { %10 = vsyncpa [#allocation5], 0  ;;  %s261_s12 = smov [#allocation3]  }
   0x3   :  { %s16_s13 = sshll.u32 %s261_s12, 4  ;;  %s17_s13 = int_to_ptr.vmem [resolvable:$true] %s16_s13 }
   0x4   :  { %s203_s14 = scalar_lea.vmem %s17_s13, 256  ;;  %p208_p1 = scmp.lt.s32.totalorder %s17_s13, %s17_s13 }
   0x5   :  { %p204_p0 = scmp.ne.s32.totalorder %s17_s13, %s203_s14  ;;  %p209_p2 = scmp.lt.s32.totalorder %s203_s14, %s203_s14 }
   0x7   :  { %p210_p3 = por %p209_p2, %p208_p1 }
   0x9   :  { %p211_p4 = pnand %p210_p3, %p204_p0 }
   0xb   :  { %214 = shalt.err (!%p211_p4)
}
   0xc   :  { %s262_s15 = smov 128   ;;  %s263_s16 = smov 8  }
   0xd   :  { %22 = dma.hbm_to_vmem [thread:$0]  %s312_s0, 256, %s17_s13, [#allocation4], %s262_s15, %s262_s15, %s263_s16  }
   0xe   :  { %s264_s19 = smov [#allocation6]  }
   0xf   :  { %s28_s20 = sshll.u32 %s264_s19, 4  ;;  %s29_s20 = int_to_ptr.vmem [resolvable:$true] %s28_s20 }
  0x10   :  { %s223_s21 = scalar_lea.vmem %s29_s20, 256  ;;  %p228_p6 = scmp.lt.s32.totalorder %s29_s20, %s29_s20 }
  0x11   :  { %p224_p5 = scmp.ne.s32.totalorder %s29_s20, %s223_s21  ;;  %p229_p7 = scmp.lt.s32.totalorder %s223_s21, %s223_s21 }
  0x13   :  { %p230_p8 = por %p229_p7, %p228_p6 }
  0x15   :  { %p231_p9 = pnand %p230_p8, %p224_p5 }
  0x17   :  { %234 = shalt.err (!%p231_p9)
}
  0x18   :  { %s265_s22 = smov 64   ;;  %s266_s23 = smov 4  }
  0x19   :  { %34 = dma.hbm_to_vmem [thread:$0]  %s313_s1, 256, %s29_s20, [#allocation7], %s265_s22, %s265_s22, %s266_s23  }
  0x1a   :  { %255 = dma.done.wait [#allocation4], 256  }
  0x1b   :  { %256 = vsyncadd [#allocation4], 4294967040 }
  0x1c   :  { %257 = dma.done.wait [#allocation7], 256  }
  0x1d   :  { %258 = vsyncadd [#allocation7], 4294967040  ;;  %vm48_vm0 = vcmask 785408   ;;  %v267_v0 = vmov 0.0   ;;  %vm268_vm1 = vmmov 0   ;;  %v193_v1 = vld [vmem:[#allocation6 + $0x8] sm:$0xff]  }
  0x1e   :  { %49 = vst.msk [vmem:[#allocation2] sm:$0xff] %vm48_vm0, %v267_v0  ;;  %50 = vst.msk [vmem:[#allocation2 + $0x8] sm:$0xff] %vm48_vm0, %v267_v0  ;;  %176 = vmatprep.subr.bf16.mxu0 %v267_v0  ;;  %180 = vmatprep.mubr.msk.bf16.mxu0 %vm268_vm1, %v267_v0  ;;  %v194_v2 = vld [vmem:[#allocation6] sm:$0xff]   ;;  %v53_v3 = vld [vmem:[#allocation3] sm:$0xff]  ;;  %vm72_vm2 = vcmask 261120   ;;  %vm144_vm3 = vcmask 781312  }
  0x1f   :  { %177 = vmatpush3.bf16.msra.mxu0 %v193_v1  ;;  %v54_v4 = vld [vmem:[#allocation3 + $0x8] sm:$0xff]  ;;  %v168_v14 = vld [vmem:[%s314_s2] ss:$0 sm:$0xff]  ;;  %s269_s26 = smov [#allocation8]  }
  0x20   :  { %178 = vmatprep.subr.bf16.mxu0 %v267_v0  ;;  %v55_v5 = vpack.c.bf16 %v54_v4, %v53_v3  ;;  %s152_s27 = sshll.u32 %s269_s26, 4  ;;  %s153_s27 = int_to_ptr.vmem [resolvable:$true] %s152_s27 }
  0x21   :  { %s235_s28 = scalar_lea.vmem %s153_s27, 128  ;;  %p240_p11 = scmp.lt.s32.totalorder %s153_s27, %s153_s27 }
  0x22   :  { %p236_p10 = scmp.ne.s32.totalorder %s153_s27, %s235_s28  ;;  %p241_p12 = scmp.lt.s32.totalorder %s235_s28, %s235_s28 }
  0x23   :  { %179 = vmatpush3.bf16.msra.mxu0 %v194_v2 }
  0x24   :  { %p242_p13 = por %p241_p12, %p240_p11 }
  0x25   :  { %v51_v6 = vld [vmem:[#allocation2] sm:$0xff]  ;;  %v52_v10 = vld [vmem:[#allocation2 + $0x8] sm:$0xff] }
  0x26   :  { %181 = vmatmul.mubr.msk.bf16.vlgmr.msra.gmra.mxu0 %vm72_vm2, %v55_v5  ;;  %p243_p0 = pnand %p242_p13, %p236_p10 }
  0xe6   :  { %v110_v7 = vpop.f32.mrf.mxu0 }
  0xe7   :  { %v117_v8 = vadd.f32 %v110_v7, %v51_v6 }
  0xe8   :  { %v182_v9 = vpop.f32.mrf.mxu0 }
  0xe9   :  { %120 = vst.msk [vmem:[#allocation2] sm:$0xff] %vm48_vm0, %v117_v8 }
  0xea   :  { %v113_v11 = vpop.f32.mrf.mxu0 }
  0xeb   :  { %v118_v12 = vadd.f32 %v113_v11, %v52_v10 }
  0xec   :  { %v183_v13 = vpop.f32.mrf.mxu0 }
  0xed   :  { %121 = vst.msk [vmem:[#allocation2 + $0x8] sm:$0xff] %vm48_vm0, %v118_v12 }
  0xf0   :  { %v125_v15 = vld [vmem:[#allocation2] sm:$0xff] }
  0xf1   :  { %v134_v16 = vadd.f32 %v168_v14, %v125_v15 }
  0xf3   :  { %v171_v17 = vpack.c.bf16 %v134_v16, %v134_v16 }
  0xf4   :  { %v126_v18 = vld [vmem:[#allocation2 + $0x8] sm:$0xff] }
  0xf5   :  { %v135_v19 = vadd.f32 %v168_v14, %v126_v18  ;;  %145 = vst.msk [vmem:[#allocation8] sm:$0xf] %vm144_vm3, %v171_v17 }
  0xf7   :  { %v172_v20 = vpack.c.bf16 %v135_v19, %v135_v19 }
  0xf9   :  { %146 = vst.msk [vmem:[#allocation8 + $0x4] sm:$0xf] %vm144_vm3, %v172_v20 }
  0xfa   :  { %246 = shalt.err (!%p243_p0)
}
  0xfb   :  { %158 = dma.vmem_to_hbm [thread:$0]  %s153_s27, 128, %s315_s3, [#allocation5], %s265_s22, %s265_s22, %s266_s23  }
  0xfc   :  { %259 = dma.done.wait [#allocation5], 128  }
  0xfd   :  { %260 = vsyncadd [#allocation5], 4294967168 }
  0xfe   :  { %162 = vsyncpa [#allocation4], 1 }
  0xff   :  { %163 = vsyncpa [#allocation7], 1 }
 0x100   :  { %164 = vsyncpa [#allocation5], 1 }

</bundles_post_ra>
